<compile_context>
chip_gen: v6e
topology: v6e:2x2x1
jax: 0.10.0
libtpu: 0.0.40
codegen_flags: <defaults>
</compile_context>

<pallas_src>
import math

import jax
import jax.numpy as jnp
import numpy as np
from jax.experimental import pallas as pl
from jax.experimental.pallas import tpu as pltpu


def _round_up(x, m):
    return (x + m - 1) // m * m


def _attention_kernel(z_ref, w1_ref, b1_ref, w2_ref, out_ref, beta_ref):
    tb, v, d = z_ref.shape          # batch tile, views, in_size

    # Per-view slices of the current batch tile (f32, kept for the final
    # weighted sum so the VPU math stays full precision).
    views = [z_ref[:, i, :] for i in range(v)]                    # V x (TB, D)

    # ---- projection: stack views into one tall MXU operand, bf16 in / f32 acc
    z_stack = jnp.concatenate(
        [x.astype(jnp.bfloat16) for x in views], axis=0)          # (V*TB, D)
    h = jnp.dot(z_stack, w1_ref[...], preferred_element_type=jnp.float32)
    h = jnp.tanh(h + b1_ref[...])                                 # (V*TB, H) f32

    # ---- hidden -> 1 score as a VPU row-dot (no N=1 MXU matmul) ----
    hw = h * w2_ref[...]                                          # (V*TB, H) f32
    scores = jnp.concatenate(
        [jnp.sum(hw[i * tb:(i + 1) * tb, :], axis=-1, keepdims=True)
         for i in range(v)],
        axis=1)                                                   # (TB, V) f32

    # ---- softmax over views (f32, numerically stabilized) ----
    m = jnp.max(scores, axis=-1, keepdims=True)
    e = jnp.exp(scores - m)
    beta = e / jnp.sum(e, axis=-1, keepdims=True)                 # (TB, V) f32

    # ---- weighted sum of views (VPU, f32) ----
    out = beta[:, 0:1] * views[0]
    for i in range(1, v):
        out = out + beta[:, i:i + 1] * views[i]

    out_ref[...] = out                                            # (TB, D)
    beta_ref[...] = beta                                          # (TB, V) tiny


def attention_forward(z, w1, b1, w2, *, block_b=256):
    """Pallas forward of Attention.

    z  : (B, V, D) f32   -- V views of D-dim embeddings per example
    w1 : (D, H)          -- first Linear weight (x @ W convention)
    b1 : (H,)            -- first Linear bias
    w2 : (1, H) or (H,)  -- second Linear weight (no bias)
    returns (out (B, D), beta (B, V, 1))
    """
    B, V, D = z.shape
    H = w1.shape[1]

    # Batch tile: multiple of 8 sublanes, capped at block_b; pad B up to a
    # whole number of tiles (padded rows are sliced off on return).
    tb = min(block_b, _round_up(B, 8))
    bp = _round_up(B, tb)
    if bp != B:
        z = jnp.pad(z, ((0, bp - B), (0, 0), (0, 0)))

    grid = (bp // tb,)

    out, beta = pl.pallas_call(
        _attention_kernel,
        grid=grid,
        in_specs=[
            pl.BlockSpec((tb, V, D), lambda i: (i, 0, 0)),   # z tile (f32)
            pl.BlockSpec((D, H), lambda i: (0, 0)),          # w1 (bf16)
            pl.BlockSpec((1, H), lambda i: (0, 0)),          # b1 (f32)
            pl.BlockSpec((1, H), lambda i: (0, 0)),          # w2 row (f32)
        ],
        out_specs=[
            pl.BlockSpec((tb, D), lambda i: (i, 0)),
            pl.BlockSpec((tb, V), lambda i: (i, 0)),
        ],
        out_shape=(
            jax.ShapeDtypeStruct((bp, D), jnp.float32),
            jax.ShapeDtypeStruct((bp, V), jnp.float32),
        ),
        compiler_params=pltpu.CompilerParams(
            dimension_semantics=("parallel",)),              # megacore shard
    )(z,
      w1.astype(jnp.bfloat16),
      b1.reshape(1, H).astype(jnp.float32),
      w2.reshape(1, H).astype(jnp.float32))

    return out[:B], beta[:B].reshape(B, V, 1)


def attention_ref(z, w1, b1, w2):
    """Pure-JAX f32 reference mirroring the PyTorch module."""
    h = jnp.tanh(jnp.einsum('bvd,dh->bvh', z, w1) + b1)
    s = jnp.einsum('bvh,h->bv', h, w2.reshape(-1))[..., None]   # (B, V, 1)
    beta = jax.nn.softmax(s, axis=1)
    return jnp.sum(beta * z, axis=1), beta


if __name__ == "__main__":
    key = jax.random.PRNGKey(0)
    k_z, k_w1, k_b1, k_w2, k_z2 = jax.random.split(key, 5)

    # small shapes consistent with the module: batch=2, views=3, in_size=32, hidden=16
    B, V, D, H = 2, 3, 32, 16

    lim1 = 1.0 / math.sqrt(D)
    lim2 = 1.0 / math.sqrt(H)
    w1 = jax.random.uniform(k_w1, (D, H), jnp.float32, -lim1, lim1)
    b1 = jax.random.uniform(k_b1, (H,), jnp.float32, -lim1, lim1)
    w2 = jax.random.uniform(k_w2, (1, H), jnp.float32, -lim2, lim2)

    z = jax.random.normal(k_z, (B, V, D), jnp.float32)

    out, beta = attention_forward(z, w1, b1, w2)
    jax.block_until_ready((out, beta))
    assert out.shape == (B, D) and beta.shape == (B, V, 1)

    out_r, beta_r = attention_ref(z, w1, b1, w2)
    # bf16 matmul operands (f32 accumulation) -> small tolerance vs f32 ref.
    np.testing.assert_allclose(np.asarray(out), np.asarray(out_r), rtol=3e-2, atol=3e-2)
    np.testing.assert_allclose(np.asarray(beta), np.asarray(beta_r), rtol=3e-2, atol=3e-2)
    assert bool(jnp.all(jnp.abs(jnp.sum(beta[..., 0], axis=1) - 1.0) < 1e-4))

    # exercise the multi-block grid + padded-batch path as well
    B2 = 20
    z2 = jax.random.normal(k_z2, (B2, V, D), jnp.float32)
    out2, beta2 = attention_forward(z2, w1, b1, w2, block_b=8)
    jax.block_until_ready((out2, beta2))
    out2_r, beta2_r = attention_ref(z2, w1, b1, w2)
    np.testing.assert_allclose(np.asarray(out2), np.asarray(out2_r), rtol=3e-2, atol=3e-2)
    np.testing.assert_allclose(np.asarray(beta2), np.asarray(beta2_r),
                               rtol=3e-2, atol=3e-2)

    print("KERNEL_OK")
</pallas_src>

<mosaic_0001>
module attributes {stable_mosaic.version = 11 : i64} {
  func.func @_attention_kernel(%arg0: i32, %arg1: memref<8x3x32xf32, #tpu.memory_space<vmem>>, %arg2: memref<32x16xbf16, #tpu.memory_space<vmem>>, %arg3: memref<1x16xf32, #tpu.memory_space<vmem>>, %arg4: memref<1x16xf32, #tpu.memory_space<vmem>>, %arg5: memref<8x32xf32, #tpu.memory_space<vmem>>, %arg6: memref<8x3xf32, #tpu.memory_space<vmem>>) attributes {dimension_semantics = [#tpu.dimension_semantics<parallel>], iteration_bounds = array<i64: 1>, scalar_prefetch = 0 : i64, scratch_operands = 0 : i64, tpu.core_type = #tpu.core_type<tc>, window_params = [{transform_indices = @transform_0, window_bounds = array<i64: 8, 3, 32>}, {pipeline_mode = #tpu.pipeline_mode<synchronous>, transform_indices = @transform_1, window_bounds = array<i64: 32, 16>}, {pipeline_mode = #tpu.pipeline_mode<synchronous>, transform_indices = @transform_2, window_bounds = array<i64: 1, 16>}, {pipeline_mode = #tpu.pipeline_mode<synchronous>, transform_indices = @transform_3, window_bounds = array<i64: 1, 16>}, {transform_indices = @transform_4, window_bounds = array<i64: 8, 32>}, {transform_indices = @transform_5, window_bounds = array<i64: 8, 3>}]} {
    %c0 = arith.constant 0 : index
    %c0_0 = arith.constant 0 : index
    %c0_1 = arith.constant 0 : index
    %0 = vector.load %arg1[%c0, %c0_0, %c0_1] : memref<8x3x32xf32, #tpu.memory_space<vmem>>, vector<8x1x32xf32>
    %1 = vector.shape_cast %0 : vector<8x1x32xf32> to vector<8x32xf32>
    %c0_2 = arith.constant 0 : index
    %c1 = arith.constant 1 : index
    %c0_3 = arith.constant 0 : index
    %2 = vector.load %arg1[%c0_2, %c1, %c0_3] : memref<8x3x32xf32, #tpu.memory_space<vmem>>, vector<8x1x32xf32>
    %3 = vector.shape_cast %2 : vector<8x1x32xf32> to vector<8x32xf32>
    %c0_4 = arith.constant 0 : index
    %c2 = arith.constant 2 : index
    %c0_5 = arith.constant 0 : index
    %4 = vector.load %arg1[%c0_4, %c2, %c0_5] : memref<8x3x32xf32, #tpu.memory_space<vmem>>, vector<8x1x32xf32>
    %5 = vector.shape_cast %4 : vector<8x1x32xf32> to vector<8x32xf32>
    %6 = arith.truncf %1 : vector<8x32xf32> to vector<8x32xbf16>
    %7 = arith.truncf %3 : vector<8x32xf32> to vector<8x32xbf16>
    %8 = arith.truncf %5 : vector<8x32xf32> to vector<8x32xbf16>
    %9 = tpu.concatenate %6, %7, %8 in 0 : vector<8x32xbf16>, vector<8x32xbf16>, vector<8x32xbf16> -> vector<24x32xbf16>
    %c0_6 = arith.constant 0 : index
    %c0_7 = arith.constant 0 : index
    %10 = vector.load %arg2[%c0_6, %c0_7] : memref<32x16xbf16, #tpu.memory_space<vmem>>, vector<32x16xbf16>
    %cst = arith.constant dense<0.000000e+00> : vector<24x16xf32>
    %11 = tpu.matmul %9, %10, %cst {dimension_numbers = #tpu.dot_dimension_numbers<[1], [0], [0], [1], [0, 0, 1, 1], [], []>} : vector<24x32xbf16>, vector<32x16xbf16>, vector<24x16xf32> -> vector<24x16xf32>
    %c0_8 = arith.constant 0 : index
    %c0_9 = arith.constant 0 : index
    %12 = vector.load %arg3[%c0_8, %c0_9] : memref<1x16xf32, #tpu.memory_space<vmem>>, vector<1x16xf32>
    %13 = vector.broadcast %12 : vector<1x16xf32> to vector<24x16xf32>
    %14 = arith.addf %11, %13 : vector<24x16xf32>
    %15 = math.tanh %14 : vector<24x16xf32>
    %c0_10 = arith.constant 0 : index
    %c0_11 = arith.constant 0 : index
    %16 = vector.load %arg4[%c0_10, %c0_11] : memref<1x16xf32, #tpu.memory_space<vmem>>, vector<1x16xf32>
    %17 = vector.broadcast %16 : vector<1x16xf32> to vector<24x16xf32>
    %18 = arith.mulf %15, %17 : vector<24x16xf32>
    %19 = vector.extract_strided_slice %18 {offsets = [0, 0], sizes = [8, 16], strides = [1, 1]} : vector<24x16xf32> to vector<8x16xf32>
    %cst_12 = arith.constant dense<0.000000e+00> : vector<8xf32>
    %20 = vector.multi_reduction <add>, %19, %cst_12 [1] : vector<8x16xf32> to vector<8xf32>
    %21 = vector.shape_cast %20 : vector<8xf32> to vector<8x1xf32>
    %22 = vector.extract_strided_slice %18 {offsets = [8, 0], sizes = [8, 16], strides = [1, 1]} : vector<24x16xf32> to vector<8x16xf32>
    %cst_13 = arith.constant dense<0.000000e+00> : vector<8xf32>
    %23 = vector.multi_reduction <add>, %22, %cst_13 [1] : vector<8x16xf32> to vector<8xf32>
    %24 = vector.shape_cast %23 : vector<8xf32> to vector<8x1xf32>
    %25 = vector.extract_strided_slice %18 {offsets = [16, 0], sizes = [8, 16], strides = [1, 1]} : vector<24x16xf32> to vector<8x16xf32>
    %cst_14 = arith.constant dense<0.000000e+00> : vector<8xf32>
    %26 = vector.multi_reduction <add>, %25, %cst_14 [1] : vector<8x16xf32> to vector<8xf32>
    %27 = vector.shape_cast %26 : vector<8xf32> to vector<8x1xf32>
    %28 = tpu.concatenate %21, %24, %27 in 1 : vector<8x1xf32>, vector<8x1xf32>, vector<8x1xf32> -> vector<8x3xf32>
    %cst_15 = arith.constant dense<0xFF800000> : vector<8xf32>
    %29 = vector.multi_reduction <maximumf>, %28, %cst_15 [1] : vector<8x3xf32> to vector<8xf32>
    %30 = vector.shape_cast %29 : vector<8xf32> to vector<8x1xf32>
    %31 = vector.broadcast %30 : vector<8x1xf32> to vector<8x3xf32>
    %32 = arith.subf %28, %31 : vector<8x3xf32>
    %33 = math.exp %32 : vector<8x3xf32>
    %cst_16 = arith.constant dense<0.000000e+00> : vector<8xf32>
    %34 = vector.multi_reduction <add>, %33, %cst_16 [1] : vector<8x3xf32> to vector<8xf32>
    %35 = vector.shape_cast %34 : vector<8xf32> to vector<8x1xf32>
    %36 = vector.broadcast %35 : vector<8x1xf32> to vector<8x3xf32>
    %37 = arith.divf %33, %36 : vector<8x3xf32>
    %38 = vector.extract_strided_slice %37 {offsets = [0, 0], sizes = [8, 1], strides = [1, 1]} : vector<8x3xf32> to vector<8x1xf32>
    %39 = vector.broadcast %38 : vector<8x1xf32> to vector<8x32xf32>
    %40 = arith.mulf %39, %1 : vector<8x32xf32>
    %41 = vector.extract_strided_slice %37 {offsets = [0, 1], sizes = [8, 1], strides = [1, 1]} : vector<8x3xf32> to vector<8x1xf32>
    %42 = vector.broadcast %41 : vector<8x1xf32> to vector<8x32xf32>
    %43 = arith.mulf %42, %3 : vector<8x32xf32>
    %44 = arith.addf %40, %43 : vector<8x32xf32>
    %45 = vector.extract_strided_slice %37 {offsets = [0, 2], sizes = [8, 1], strides = [1, 1]} : vector<8x3xf32> to vector<8x1xf32>
    %46 = vector.broadcast %45 : vector<8x1xf32> to vector<8x32xf32>
    %47 = arith.mulf %46, %5 : vector<8x32xf32>
    %48 = arith.addf %44, %47 : vector<8x32xf32>
    %c0_17 = arith.constant 0 : index
    %c0_18 = arith.constant 0 : index
    %49 = vector.load %arg5[%c0_17, %c0_18] : memref<8x32xf32, #tpu.memory_space<vmem>>, vector<8x32xf32>
    tpu.vector_store %arg5[%c0_17, %c0_18], %48 {strides = array<i32>} : memref<8x32xf32, #tpu.memory_space<vmem>>, vector<8x32xf32>,
    %c0_19 = arith.constant 0 : index
    %c0_20 = arith.constant 0 : index
    %50 = vector.load %arg6[%c0_19, %c0_20] : memref<8x3xf32, #tpu.memory_space<vmem>>, vector<8x3xf32>
    tpu.vector_store %arg6[%c0_19, %c0_20], %37 {strides = array<i32>} : memref<8x3xf32, #tpu.memory_space<vmem>>, vector<8x3xf32>,
    return
  }
  func.func @transform_0(%arg0: i32) -> (i32, i32, i32) {
    %c0_i32 = arith.constant 0 : i32
    %c0_i32_0 = arith.constant 0 : i32
    %c0_i32_1 = arith.constant 0 : i32
    return %arg0, %c0_i32, %c0_i32_0 : i32, i32, i32
  }
  func.func @transform_1(%arg0: i32) -> (i32, i32) {
    %c0_i32 = arith.constant 0 : i32
    %c0_i32_0 = arith.constant 0 : i32
    %c0_i32_1 = arith.constant 0 : i32
    return %c0_i32, %c0_i32_0 : i32, i32
  }
  func.func @transform_2(%arg0: i32) -> (i32, i32) {
    %c0_i32 = arith.constant 0 : i32
    %c0_i32_0 = arith.constant 0 : i32
    %c0_i32_1 = arith.constant 0 : i32
    return %c0_i32, %c0_i32_0 : i32, i32
  }
  func.func @transform_3(%arg0: i32) -> (i32, i32) {
    %c0_i32 = arith.constant 0 : i32
    %c0_i32_0 = arith.constant 0 : i32
    %c0_i32_1 = arith.constant 0 : i32
    return %c0_i32, %c0_i32_0 : i32, i32
  }
  func.func @transform_4(%arg0: i32) -> (i32, i32) {
    %c0_i32 = arith.constant 0 : i32
    %c0_i32_0 = arith.constant 0 : i32
    return %arg0, %c0_i32 : i32, i32
  }
  func.func @transform_5(%arg0: i32) -> (i32, i32) {
    %c0_i32 = arith.constant 0 : i32
    %c0_i32_0 = arith.constant 0 : i32
    return %arg0, %c0_i32 : i32, i32
  }
}

</mosaic_0001>

<bundles_post_ra>
// kernel: tpu_custom_call.1
= control target key start
LH: loop header
LB: loop body
LE: loop exit
PB: predicated region body
PF: predicated region fallthrough
CT: control target
= control target key end

     0   :  { %vm86_vm0 = vcmask 1041409   ;;  %vm89_vm1 = vcmask 1042434   ;;  %vm92_vm2 = vcmask 1043459   ;;  %vm95_vm3 = vcmask 1044484   ;;  %s749_s0 = inlined_call_operand.vmem [shape: f32[8,3,32], index: 0, kind: input, shape index: {}]   ;;  %s750_s1 = inlined_call_operand.vmem [shape: bf16[32,16], index: 1, kind: input, shape index: {}]   ;;  %s751_s2 = inlined_call_operand.vmem [shape: f32[1,16], index: 2, kind: input, shape index: {}]   ;;  %s752_s3 = inlined_call_operand.vmem [shape: f32[1,16], index: 3, kind: input, shape index: {}]   ;;  %s753_s4 = inlined_call_operand.hbm [shape: f32[8,32], index: 4, kind: output, shape index: {0}]   ;;  %s754_s5 = inlined_call_operand.vmem [shape: f32[8,3], index: 5, kind: output, shape index: {1}]  }
   0x1   :  { %v422_v0 = vld [vmem:[%s750_s1 + $0x8] sm:$0xff]   ;;  %v423_v1 = vld [vmem:[%s750_s1] sm:$0xff]   ;;  %v519_v6 = vld [vmem:[%s749_s0 + $0x10] sm:$0x1]  ;;  %vm98_vm4 = vcmask 1045509  }
   0x2   :  { %406 = vmatprep.subr.bf16.mxu0 %v422_v0  ;;  %v499_v2 = vld [vmem:[%s749_s0] sm:$0x1]  ;;  %v504_v3 = vld [vmem:[%s749_s0 + $0x4] sm:$0x1]  ;;  %v509_v4 = vld [vmem:[%s749_s0 + $0x8] sm:$0x1]  ;;  %v49_v15 = vpack.c.bf16 %v519_v6, %v519_v6 }
   0x3   :  { %407 = vmatpush3.bf16.msra.mxu0 %v422_v0  ;;  %v514_v5 = vld [vmem:[%s749_s0 + $0xc] sm:$0x1]  ;;  %v524_v7 = vld [vmem:[%s749_s0 + $0x14] sm:$0x1]  ;;  %v45_v8 = vpack.c.bf16 %v499_v2, %v499_v2  ;;  %v46_v9 = vpack.c.bf16 %v504_v3, %v504_v3  ;;  %v47_v10 = vpack.c.bf16 %v509_v4, %v509_v4  ;;  %v535_v11 = vld [vmem:[%s749_s0 + $0x18] sm:$0x1] }
   0x4   :  { %408 = vmatprep.subr.bf16.mxu0 %v423_v1  ;;  %v540_v12 = vld [vmem:[%s749_s0 + $0x1c] sm:$0x1]  ;;  %v545_v13 = vld [vmem:[%s749_s0 + $0x1] sm:$0x1]  ;;  %v48_v14 = vpack.c.bf16 %v514_v5, %v514_v5  ;;  %v50_v16 = vpack.c.bf16 %v524_v7, %v524_v7  ;;  %v556_v17 = vld [vmem:[%s749_s0 + $0x5] sm:$0x1]  ;;  %v51_v20 = vpack.c.bf16 %v535_v11, %v535_v11  ;;  %v81_v38 = vunpack.c.l.b16 %v49_v15 }
   0x5   :  { %v561_v18 = vld [vmem:[%s749_s0 + $0x9] sm:$0x1]  ;;  %v566_v19 = vld [vmem:[%s749_s0 + $0xd] sm:$0x1]  ;;  %v52_v21 = vpack.c.bf16 %v540_v12, %v540_v12  ;;  %v53_v22 = vpack.c.bf16 %v545_v13, %v545_v13  ;;  %v77_v23 = vunpack.c.l.b16 %v45_v8  ;;  %v577_v24 = vld [vmem:[%s749_s0 + $0x11] sm:$0x1]  ;;  %v54_v27 = vpack.c.bf16 %v556_v17, %v556_v17 }
   0x6   :  { %v582_v25 = vld [vmem:[%s749_s0 + $0x15] sm:$0x1]  ;;  %v587_v26 = vld [vmem:[%s749_s0 + $0x19] sm:$0x1]  ;;  %v55_v28 = vpack.c.bf16 %v561_v18, %v561_v18  ;;  %v56_v29 = vpack.c.bf16 %v566_v19, %v566_v19  ;;  %v78_v30 = vunpack.c.l.b16 %v46_v9  ;;  %v598_v31 = vld [vmem:[%s749_s0 + $0x1d] sm:$0x1]  ;;  %v57_v32 = vpack.c.bf16 %v577_v24, %v577_v24 }
   0x7   :  { %409 = vmatpush3.bf16.msra.mxu0 %v423_v1  ;;  %v58_v33 = vpack.c.bf16 %v582_v25, %v582_v25  ;;  %v59_v34 = vpack.c.bf16 %v587_v26, %v587_v26  ;;  %v79_v35 = vunpack.c.l.b16 %v47_v10  ;;  %v60_v36 = vpack.c.bf16 %v598_v31, %v598_v31 }
   0x8   :  { %v80_v37 = vunpack.c.l.b16 %v48_v14  ;;  %v82_v39 = vunpack.c.l.b16 %v50_v16  ;;  %v83_v40 = vunpack.c.l.b16 %v51_v20  ;;  %v84_v41 = vunpack.c.l.b16 %v52_v21 }
   0x9   :  { %v85_v42 = vrot.slane %v78_v30, 7  ;;  %v88_v43 = vrot.slane %v79_v35, 6  ;;  %v94_v45 = vrot.slane %v81_v38, 4 }
   0xa   :  { %v91_v44 = vrot.slane %v80_v37, 5  ;;  %v97_v47 = vrot.slane %v82_v39, 3  ;;  %v100_v48 = vrot.slane %v83_v40, 2 }
   0xb   :  { %v87_v46 = vsel %vm86_vm0, %v85_v42, %v77_v23 }
   0xc   :  { %11 = vsyncpa [#allocation3], 0  ;;  %v90_v49 = vsel %vm89_vm1, %v88_v43, %v87_v46  ;;  %vm101_vm5 = vcmask 1046534   ;;  %v103_v50 = vrot.slane %v84_v41, 1  ;;  %vm104_vm6 = vcmask 1047559  }
   0xd   :  { %v93_v51 = vsel %vm92_vm2, %v91_v44, %v90_v49  ;;  %v115_v52 = vunpack.c.l.b16 %v53_v22  ;;  %v116_v53 = vunpack.c.l.b16 %v54_v27  ;;  %v117_v54 = vunpack.c.l.b16 %v55_v28  ;;  %v615_v59 = vld [vmem:[%s749_s0 + $0x2] sm:$0x1]  ;;  %v621_v0 = vld [vmem:[%s749_s0 + $0x6] sm:$0x1]  ;;  %v626_v1 = vld [vmem:[%s749_s0 + $0xa] sm:$0x1] }
   0xe   :  { %v96_v55 = vsel %vm95_vm3, %v94_v45, %v93_v51  ;;  %v118_v56 = vunpack.c.l.b16 %v56_v29  ;;  %v119_v57 = vunpack.c.l.b16 %v57_v32  ;;  %v120_v58 = vunpack.c.l.b16 %v58_v33  ;;  %v632_v15 = vld [vmem:[%s749_s0 + $0xe] sm:$0x1]  ;;  %v639_v23 = vld [vmem:[%s749_s0 + $0x12] sm:$0x1]  ;;  %v644_v27 = vld [vmem:[%s749_s0 + $0x16] sm:$0x1] }
   0xf   :  { %v99_v60 = vsel %vm98_vm4, %v97_v47, %v96_v55  ;;  %v121_v61 = vunpack.c.l.b16 %v59_v34  ;;  %v122_v62 = vunpack.c.l.b16 %v60_v36  ;;  %v123_v63 = vrot.slane %v116_v53, 7  ;;  %v650_v32 = vld [vmem:[%s749_s0 + $0x1a] sm:$0x1]  ;;  %v655_v33 = vld [vmem:[%s749_s0 + $0x1e] sm:$0x1] }
  0x10   :  { %v102_v8 = vsel %vm101_vm5, %v100_v48, %v99_v60  ;;  %v125_v9 = vrot.slane %v117_v54, 6  ;;  %v127_v10 = vrot.slane %v118_v56, 5  ;;  %v129_v14 = vrot.slane %v119_v57, 4 }
  0x11   :  { %v105_v16 = vsel %vm104_vm6, %v103_v50, %v102_v8  ;;  %v124_v20 = vsel %vm86_vm0, %v123_v63, %v115_v52  ;;  %v131_v21 = vrot.slane %v120_v58, 3  ;;  %v133_v22 = vrot.slane %v121_v61, 2 }
  0x12   :  { %v106_v28 = vpack.c.b16 %v105_v16, %v105_v16  ;;  %v126_v29 = vsel %vm89_vm1, %v125_v9, %v124_v20  ;;  %v135_v30 = vrot.slane %v122_v62, 1  ;;  %vm169_vm7 = vcmask 1043456  }
  0x13   :  { %v128_v34 = vsel %vm92_vm2, %v127_v10, %v126_v29  ;;  %vm196_vm8 = vcmask 261120   ;;  %v61_v35 = vpack.c.bf16 %v615_v59, %v615_v59  ;;  %v62_v36 = vpack.c.bf16 %v621_v0, %v621_v0  ;;  %v396_v29 = vld [vmem:[%s751_s2] ss:$0 sm:$0xff] }
  0x14   :  { %v130_v37 = vsel %vm95_vm3, %v129_v14, %v128_v34  ;;  %v63_v38 = vpack.c.bf16 %v626_v1, %v626_v1  ;;  %v64_v39 = vpack.c.bf16 %v632_v15, %v632_v15  ;;  %v65_v40 = vpack.c.bf16 %v639_v23, %v639_v23 }
  0x15   :  { %v132_v41 = vsel %vm98_vm4, %v131_v21, %v130_v37  ;;  %v66_v42 = vpack.c.bf16 %v644_v27, %v644_v27  ;;  %v67_v43 = vpack.c.bf16 %v650_v32, %v650_v32  ;;  %v68_v44 = vpack.c.bf16 %v655_v33, %v655_v33 }
  0x16   :  { %v134_v45 = vsel %vm101_vm5, %v133_v22, %v132_v41  ;;  %v146_v46 = vunpack.c.l.b16 %v61_v35  ;;  %v147_v47 = vunpack.c.l.b16 %v62_v36  ;;  %v148_v48 = vunpack.c.l.b16 %v63_v38 }
  0x17   :  { %v136_v49 = vsel %vm104_vm6, %v135_v30, %v134_v45  ;;  %v149_v50 = vunpack.c.l.b16 %v64_v39  ;;  %v150_v51 = vunpack.c.l.b16 %v65_v40  ;;  %v151_v52 = vunpack.c.l.b16 %v66_v42  ;;  %v401_v40 = vld [vmem:[%s752_s3] ss:$0 sm:$0xff] }
  0x18   :  { %v137_v53 = vpack.c.b16 %v136_v49, %v136_v49  ;;  %v152_v54 = vunpack.c.l.b16 %v67_v43  ;;  %v153_v55 = vunpack.c.l.b16 %v68_v44  ;;  %v154_v56 = vrot.slane %v147_v47, 7 }
  0x19   :  { %v156_v57 = vrot.slane %v148_v48, 6  ;;  %v158_v58 = vrot.slane %v149_v50, 5  ;;  %v160_v60 = vrot.slane %v150_v51, 4  ;;  %v162_v63 = vrot.slane %v151_v52, 3 }
  0x1a   :  { %v172_v61 = vsel %vm169_vm7, %v106_v28, %v137_v53  ;;  %v155_v62 = vsel %vm86_vm0, %v154_v56, %v146_v46  ;;  %v164_v9 = vrot.slane %v152_v54, 2  ;;  %v166_v14 = vrot.slane %v153_v55, 1 }
  0x1b   :  { %410 = vmatprep.mubr.msk.bf16.mxu0 %vm196_vm8, %v172_v61  ;;  %v157_v8 = vsel %vm89_vm1, %v156_v57, %v155_v62  ;;  %vm263_vm9 = vcmask 130048   ;;  %vm273_vm10 = vcmask 7168   ;;  %vm275_vm11 = vcmask 15360  }
  0x1c   :  { %v159_v10 = vsel %vm92_vm2, %v158_v58, %v157_v8  ;;  %vm277_vm12 = vcmask 23552   ;;  %v456_v62 = vmov 1  }
  0x1d   :  { %v161_v16 = vsel %vm95_vm3, %v160_v60, %v159_v10  ;;  %419 = vset.pattern.permute.xlu0 %v456_v62 }
  0x1e   :  { %v163_v20 = vsel %vm98_vm4, %v162_v63, %v161_v16  ;;  %v457_v63 = vmov 0   ;;  %v330_v16 = vrot.slane %v556_v17, 7 }
  0x1f   :  { %v165_v21 = vsel %vm101_vm5, %v164_v9, %v163_v20  ;;  %418 = vset.pattern.permute.xlu1 %v457_v63  ;;  %v302_v20 = vrot.slane %v504_v3, 7 }
  0x20   :  { %v167_v22 = vsel %vm104_vm6, %v166_v14, %v165_v21  ;;  %v458_v14 = vmov 2   ;;  %v332_v21 = vrot.slane %v561_v18, 6  ;;  %v361_v18 = vrot.slane %v626_v1, 6 }
  0x21   :  { %v168_v28 = vpack.c.b16 %v167_v22, %v167_v22  ;;  %v304_v22 = vrot.slane %v509_v4, 6 }
  0x23   :  { %411 = vmatmul.mubr.msk.bf16.vlgmr.msra.gmra.mxu0 %vm196_vm8, %v168_v28  ;;  %v331_v28 = vsel %vm86_vm0, %v330_v16, %v545_v13  ;;  %v336_v13 = vrot.slane %v577_v24, 4  ;;  %v365_v24 = vrot.slane %v639_v23, 4 }
  0x24   :  { %v333_v17 = vsel %vm89_vm1, %v332_v21, %v331_v28 }
  0xe3   :  { %v412_v30 = vpop.f32.mrf.mxu0 }
  0xe4   :  { %v245_v34 = vadd.f32 %v412_v30, %v396_v29  ;;  %v359_v30 = vrot.slane %v621_v0, 7 }
  0xe5   :  { %v236_v35 = vpop.f32.mrf.mxu0 }
  0xe6   :  { %424 = vtanh.f32 %v245_v34  ;;  %v237_v36 = vadd.f32 %v396_v29, %v236_v35  ;;  %v334_v34 = vrot.slane %v566_v19, 5  ;;  %v306_v35 = vrot.slane %v514_v5, 5 }
  0xe7   :  { %v413_v37 = vpop.f32.mrf.mxu0  ;;  %v360_v4 = vsel %vm86_vm0, %v359_v30, %v615_v59  ;;  %v363_v19 = vrot.slane %v632_v15, 5 }
  0xe8   :  { %426 = vtanh.f32 %v237_v36  ;;  %v308_v36 = vrot.slane %v519_v6, 4  ;;  %v362_v5 = vsel %vm89_vm1, %v361_v18, %v360_v4  ;;  %v338_v37 = vrot.slane %v582_v25, 3 }
  0xe9   :  { %v239_v38 = vpop.f32.mrf.mxu0  ;;  %v364_v6 = vsel %vm92_vm2, %v363_v19, %v362_v5  ;;  %v367_v25 = vrot.slane %v644_v27, 3  ;;  %v371_v27 = vrot.slane %v655_v33, 1 }
  0xea   :  { %v240_v39 = vadd.f32 %v396_v29, %v239_v38  ;;  %v303_v29 = vsel %vm86_vm0, %v302_v20, %v499_v2  ;;  %v335_v2 = vsel %vm92_vm2, %v334_v34, %v333_v17  ;;  %v310_v38 = vrot.slane %v524_v7, 3 }
  0xeb   :  { %v305_v3 = vsel %vm89_vm1, %v304_v22, %v303_v29  ;;  %v337_v1 = vsel %vm95_vm3, %v336_v13, %v335_v2  ;;  %v366_v7 = vsel %vm95_vm3, %v365_v24, %v364_v6 }
  0xec   :  { %428 = vtanh.f32 %v240_v39  ;;  %v307_v0 = vsel %vm92_vm2, %v306_v35, %v305_v3  ;;  %v340_v39 = vrot.slane %v587_v26, 2  ;;  %v339_v15 = vsel %vm98_vm4, %v338_v37, %v337_v1 }
  0xed   :  { %v309_v59 = vsel %vm95_vm3, %v308_v36, %v307_v0  ;;  %v369_v26 = vrot.slane %v650_v32, 2 }
  0xee   :  { %v341_v23 = vsel %vm101_vm5, %v340_v39, %v339_v15 }
  0xf3   :  { %v425_v41 = vpop.eup %424 }
  0xf4   :  { %v262_v42 = vmul.f32 %v425_v41, %v401_v40  ;;  %v311_v41 = vsel %vm98_vm4, %v310_v38, %v309_v59 }
  0xf5   :  { %v427_v43 = vpop.eup %426 }
  0xf6   :  { %v270_v44 = vsel %vm263_vm9, %v262_v42, 0.0  ;;  %v260_v45 = vmul.f32 %v427_v43, %v401_v40  ;;  %v342_v42 = vrot.slane %v598_v31, 1  ;;  %v314_v43 = vrot.slane %v540_v12, 1 }
  0xf7   :  { %271 = vadd.xlane.f32.xlu1 %v270_v44 }
  0xf8   :  { %v264_v46 = vsel %vm263_vm9, %v260_v45, 0.0  ;;  %v343_v45 = vsel %vm104_vm6, %v342_v42, %v341_v23 }
  0xf9   :  { %v429_v47 = vpop.eup %428  ;;  %265 = vadd.xlane.f32.xlu0 %v264_v46 }
  0xfa   :  { %v261_v48 = vmul.f32 %v429_v47, %v401_v40  ;;  %v312_v40 = vrot.slane %v535_v11, 2  ;;  %v368_v11 = vsel %vm98_vm4, %v367_v25, %v366_v7 }
  0xfb   :  { %v370_v31 = vsel %vm101_vm5, %v369_v26, %v368_v11 }
  0xfc   :  { %v267_v49 = vsel %vm263_vm9, %v261_v48, 0.0  ;;  %v313_v44 = vsel %vm101_vm5, %v312_v40, %v311_v41 }
  0xfd   :  { %268 = vadd.xlane.f32.xlu0 %v267_v49  ;;  %v315_v46 = vsel %vm104_vm6, %v314_v43, %v313_v44 }
 0x180   :  { %v272_v52 = vpop.xlane.xlu1 %271 }
 0x182   :  { %v266_v50 = vpop.xlane.xlu0 %265 }
 0x186   :  { %v269_v51 = vpop.xlane.xlu0 %268 }
 0x187   :  { %v274_v53 = vsel %vm273_vm10, %v266_v50, %v269_v51  ;;  %v372_v50 = vsel %vm104_vm6, %v371_v27, %v370_v31 }
 0x188   :  { %v276_v54 = vsel %vm275_vm11, %v274_v53, %v272_v52 }
 0x189   :  { %v278_v55 = vsel %vm277_vm12, %v276_v54, -inf }
 0x18a   :  { %279 = vmax.xlane.f32.xlu1 %v278_v55 }
 0x213   :  { %v280_v56 = vpop.xlane.xlu1 %279 }
 0x214   :  { %v281_v57 = vsub.f32 %v276_v54, %v280_v56 }
 0x216   :  { %v282_v58 = vmul.f32 1.442695, %v281_v57 }
 0x218   :  { %430 = vpow2.f32 %v282_v58 }
 0x225   :  { %v431_v60 = vpop.eup %430 }
 0x226   :  { %v284_v61 = vsel %vm277_vm12, %v431_v60, 0.0 }
 0x227   :  { %285 = vadd.xlane.f32.xlu0 %v284_v61 }
 0x2b0   :  { %v286_v8 = vpop.xlane.xlu0 %285 }
 0x2b1   :  { %432 = vrcp.f32 %v286_v8 }
 0x2be   :  { %v433_v9 = vpop.eup %432 }
 0x2bf   :  { %v288_v10 = vmul.f32 %v433_v9, %v431_v60 }
 0x2c1   :  { %319 = vperm.xlu0 %419, %v288_v10   ;;  %377 = vst.msk [vmem:[%s754_s5] sm:$0xff] %vm277_vm12, %v288_v10  ;;  %291 = vperm.xlu1 %418, %v288_v10   ;;  %s459_s5 = smov [#allocation2]  }
 0x2c2   :  { %s384_s21 = sshll.u32 %s459_s5, 4  ;;  %s385_s21 = int_to_ptr.vmem [resolvable:$true] %s384_s21 }
 0x2c3   :  { %s434_s22 = scalar_lea.vmem %s385_s21, 128  ;;  %p439_p1 = scmp.lt.s32.totalorder %s385_s21, %s385_s21 }
 0x2c4   :  { %p435_p0 = scmp.ne.s32.totalorder %s385_s21, %s434_s22  ;;  %p440_p2 = scmp.lt.s32.totalorder %s434_s22, %s434_s22 }
 0x2c5   :  { %420 = vset.pattern.permute.xlu1 %v458_v14  ;;  %421 = vset.pattern.permute.xlu0 %v458_v14 }
 0x2c6   :  { %348 = vperm.xlu1 %420, %v288_v10   ;;  %p441_p3 = por %p440_p2, %p439_p1 }
 0x2c8   :  { %p442_p4 = pnand %p441_p3, %p435_p0 }
 0x33c   :  { %v320_v47 = vpop.permute.xlu0 %319  ;;  %v292_v48 = vpop.permute.xlu1 %291 }
 0x33d   :  { %v345_v49 = vmul.f32 %v343_v45, %v320_v47  ;;  %v317_v12 = vmul.f32 %v315_v46, %v292_v48 }
 0x33f   :  { %v346_v32 = vadd.f32 %v345_v49, %v317_v12 }
 0x341   :  { %v349_v51 = vpop.permute.xlu1 %348 }
 0x342   :  { %v374_v52 = vmul.f32 %v372_v50, %v349_v51 }
 0x344   :  { %v375_v53 = vadd.f32 %v374_v52, %v346_v32 }
 0x346   :  { %376 = vst.msk [vmem:[#allocation2] sm:$0xff] %vm196_vm8, %v375_v53 }
 0x347   :  { %445 = shalt.err (!%p442_p4)
}
 0x348   :  { %387 = dma.vmem_to_hbm [thread:$0]  %s385_s21, 128, %s753_s4, [#allocation3]  }
 0x349   :  { %454 = dma.done.wait [#allocation3], 128  }
 0x34a   :  { %455 = vsyncadd [#allocation3], 4294967168 }
 0x34b   :  { %395 = vsyncpa [#allocation3], 1 }

</bundles_post_ra>
